<compile_context>
chip_gen: v5e
topology: v5e:2x2
jax: 0.10.0
libtpu: 0.0.40
codegen_flags: <defaults>
</compile_context>

<pallas_src>
import numpy as np

import jax
import jax.numpy as jnp
from jax.experimental import pallas as pl
from jax.experimental.pallas import tpu as pltpu

P_DROP = 0.2
_LANE = 128


def _round_up(n, m):
    return (n + m - 1) // m * m


def _ae_dropout_kernel(x_ref, m0_ref, m1_ref, m2_ref, m3_ref,
                       w1_ref, b1_ref, w2_ref, b2_ref,
                       w3_ref, b3_ref, w4_ref, b4_ref,
                       out_ref):
    # Activations stay in f32; matmul operands are cast to bf16 so the MXU
    # runs at bf16 throughput with f32 accumulation.
    x = x_ref[...]                                               # (TM, D) f32

    # ---- encode ----
    dx = (x * m0_ref[...]).astype(jnp.bfloat16)
    h = jnp.tanh(jnp.dot(dx, w1_ref[...],
                         preferred_element_type=jnp.float32) + b1_ref[...])
    hd = (h * m1_ref[...]).astype(jnp.bfloat16)
    z = jnp.dot(hd, w2_ref[...],
                preferred_element_type=jnp.float32) + b2_ref[...]

    # ---- decode ----
    dz = (z * m2_ref[...]).astype(jnp.bfloat16)
    h2 = jnp.tanh(jnp.dot(dz, w3_ref[...],
                          preferred_element_type=jnp.float32) + b3_ref[...])
    h2d = (h2 * m3_ref[...]).astype(jnp.bfloat16)
    recon = jnp.dot(h2d, w4_ref[...],
                    preferred_element_type=jnp.float32) + b4_ref[...]

    out_ref[...] = recon.astype(out_ref.dtype)


def ae_dropout_forward(x, params, seed=0, block_m=256):
    """x: (B, S1, S2) float32.  params: dict of (in,out) weights, (1,out) biases.

    block_m: batch tile rows (use ~128 on v7x if D is very large to respect
    its 64 MiB VMEM; 256 is fine for v5e/v6e and these sizes).
    """
    B, S1, S2 = x.shape
    D = S1 * S2
    h_dim = params["w1"].shape[1]
    z_dim = params["w2"].shape[1]
    Hp = _round_up(h_dim, _LANE)
    Zp = _round_up(z_dim, _LANE)

    x_flat = x.reshape(B, D).astype(jnp.float32)

    # Zero-pad hidden/latent widths to lane-dense multiples of 128.  Padded
    # weight rows/cols and bias entries are zero, so the math is unchanged.
    def pad_cols(a, n):
        return a if a.shape[1] == n else jnp.pad(a, ((0, 0), (0, n - a.shape[1])))

    def pad_rows(a, n):
        return a if a.shape[0] == n else jnp.pad(a, ((0, n - a.shape[0]), (0, 0)))

    w1 = pad_cols(params["w1"], Hp).astype(jnp.bfloat16)
    b1 = pad_cols(params["b1"], Hp).astype(jnp.float32)
    w2 = pad_cols(pad_rows(params["w2"], Hp), Zp).astype(jnp.bfloat16)
    b2 = pad_cols(params["b2"], Zp).astype(jnp.float32)
    w3 = pad_cols(pad_rows(params["w3"], Zp), Hp).astype(jnp.bfloat16)
    b3 = pad_cols(params["b3"], Hp).astype(jnp.float32)
    w4 = pad_rows(params["w4"], Hp).astype(jnp.bfloat16)
    b4 = params["b4"].astype(jnp.float32)

    # Training-mode dropout masks (p=0.2), pre-scaled by 1/(1-p).
    # TODO(synk): random stream comes from jax.random, not torch's RNG.
    keep_scale = 1.0 / (1.0 - P_DROP)
    k0, k1, k2, k3 = jax.random.split(jax.random.PRNGKey(seed), 4)

    def mask(k, shape):
        return (jax.random.bernoulli(k, 1.0 - P_DROP, shape)
                .astype(jnp.float32) * keep_scale)

    m0 = mask(k0, (B, D))
    m1 = mask(k1, (B, Hp))
    m2 = mask(k2, (B, Zp))
    m3 = mask(k3, (B, Hp))

    # Batch tiling: full batch if small, otherwise 8-aligned tiles of block_m.
    tm = B if B <= block_m else block_m
    grid = (pl.cdiv(B, tm),)

    def rows(d):
        return pl.BlockSpec((tm, d), lambda i: (i, 0))

    def resident(shape):
        return pl.BlockSpec(shape, lambda i: (0, 0))

    out_flat = pl.pallas_call(
        _ae_dropout_kernel,
        out_shape=jax.ShapeDtypeStruct((B, D), jnp.float32),
        grid=grid,
        in_specs=[rows(D),                     # x
                  rows(D), rows(Hp), rows(Zp), rows(Hp),   # dropout masks
                  resident(w1.shape), resident(b1.shape),
                  resident(w2.shape), resident(b2.shape),
                  resident(w3.shape), resident(b3.shape),
                  resident(w4.shape), resident(b4.shape)],
        out_specs=rows(D),
        compiler_params=pltpu.CompilerParams(
            dimension_semantics=("parallel",),
            vmem_limit_bytes=48 * 1024 * 1024),
    )(x_flat, m0, m1, m2, m3, w1, b1, w2, b2, w3, b3, w4, b4)

    return out_flat.reshape(B, S1, S2)


def init_params(key, in_dim, h_dim, z_dim):
    """Mimics the module's init: xavier_normal(gain=sqrt(2)) weights,
    uniform(-1/sqrt(fan_in)) biases.  Weights stored transposed (in, out)."""
    gain = float(np.sqrt(2.0))

    def xavier_t(k, fan_in, fan_out):
        std = gain * np.sqrt(2.0 / (fan_in + fan_out))
        # torch stores (out, in); we store the transpose (in, out) directly.
        return std * jax.random.normal(k, (fan_in, fan_out), dtype=jnp.float32)

    def bias(k, fan_in, fan_out):
        bound = 1.0 / np.sqrt(fan_in)
        return jax.random.uniform(k, (1, fan_out), dtype=jnp.float32,
                                  minval=-bound, maxval=bound)

    ks = jax.random.split(key, 8)
    return {
        "w1": xavier_t(ks[0], in_dim, h_dim), "b1": bias(ks[1], in_dim, h_dim),
        "w2": xavier_t(ks[2], h_dim, z_dim),  "b2": bias(ks[3], h_dim, z_dim),
        "w3": xavier_t(ks[4], z_dim, h_dim),  "b3": bias(ks[5], z_dim, h_dim),
        "w4": xavier_t(ks[6], h_dim, in_dim), "b4": bias(ks[7], h_dim, in_dim),
    }


if __name__ == "__main__":
    # shape = (B, S1, S2) as the module expects (fc sizes use shape[1]*shape[2])
    B, S1, S2 = 2, 8, 16          # D = 128
    h_dim, z_dim = 32, 16

    key = jax.random.PRNGKey(0)
    k_x, k_p = jax.random.split(key)
    x = jax.random.normal(k_x, (B, S1, S2), dtype=jnp.float32)
    params = init_params(k_p, S1 * S2, h_dim, z_dim)

    out = ae_dropout_forward(x, params, seed=0)
    jax.block_until_ready(out)

    assert out.shape == x.shape and out.dtype == jnp.float32
    assert bool(jnp.all(jnp.isfinite(out)))
    print("KERNEL_OK")
</pallas_src>

<mosaic_0001>
module attributes {stable_mosaic.version = 11 : i64} {
  func.func @_ae_dropout_kernel(%arg0: i32, %arg1: memref<2x128xf32, #tpu.memory_space<vmem>>, %arg2: memref<2x128xf32, #tpu.memory_space<vmem>>, %arg3: memref<2x128xf32, #tpu.memory_space<vmem>>, %arg4: memref<2x128xf32, #tpu.memory_space<vmem>>, %arg5: memref<2x128xf32, #tpu.memory_space<vmem>>, %arg6: memref<128x128xbf16, #tpu.memory_space<vmem>>, %arg7: memref<1x128xf32, #tpu.memory_space<vmem>>, %arg8: memref<128x128xbf16, #tpu.memory_space<vmem>>, %arg9: memref<1x128xf32, #tpu.memory_space<vmem>>, %arg10: memref<128x128xbf16, #tpu.memory_space<vmem>>, %arg11: memref<1x128xf32, #tpu.memory_space<vmem>>, %arg12: memref<128x128xbf16, #tpu.memory_space<vmem>>, %arg13: memref<1x128xf32, #tpu.memory_space<vmem>>, %arg14: memref<2x128xf32, #tpu.memory_space<vmem>>) attributes {dimension_semantics = [#tpu.dimension_semantics<parallel>], iteration_bounds = array<i64: 1>, scalar_prefetch = 0 : i64, scratch_operands = 0 : i64, tpu.core_type = #tpu.core_type<tc>, window_params = [{transform_indices = @transform_0, window_bounds = array<i64: 2, 128>}, {transform_indices = @transform_1, window_bounds = array<i64: 2, 128>}, {transform_indices = @transform_2, window_bounds = array<i64: 2, 128>}, {transform_indices = @transform_3, window_bounds = array<i64: 2, 128>}, {transform_indices = @transform_4, window_bounds = array<i64: 2, 128>}, {pipeline_mode = #tpu.pipeline_mode<synchronous>, transform_indices = @transform_5, window_bounds = array<i64: 128, 128>}, {pipeline_mode = #tpu.pipeline_mode<synchronous>, transform_indices = @transform_6, window_bounds = array<i64: 1, 128>}, {pipeline_mode = #tpu.pipeline_mode<synchronous>, transform_indices = @transform_7, window_bounds = array<i64: 128, 128>}, {pipeline_mode = #tpu.pipeline_mode<synchronous>, transform_indices = @transform_8, window_bounds = array<i64: 1, 128>}, {pipeline_mode = #tpu.pipeline_mode<synchronous>, transform_indices = @transform_9, window_bounds = array<i64: 128, 128>}, {pipeline_mode = #tpu.pipeline_mode<synchronous>, transform_indices = @transform_10, window_bounds = array<i64: 1, 128>}, {pipeline_mode = #tpu.pipeline_mode<synchronous>, transform_indices = @transform_11, window_bounds = array<i64: 128, 128>}, {pipeline_mode = #tpu.pipeline_mode<synchronous>, transform_indices = @transform_12, window_bounds = array<i64: 1, 128>}, {transform_indices = @transform_13, window_bounds = array<i64: 2, 128>}]} {
    %c0 = arith.constant 0 : index
    %c0_0 = arith.constant 0 : index
    %0 = vector.load %arg1[%c0, %c0_0] : memref<2x128xf32, #tpu.memory_space<vmem>>, vector<2x128xf32>
    %c0_1 = arith.constant 0 : index
    %c0_2 = arith.constant 0 : index
    %1 = vector.load %arg2[%c0_1, %c0_2] : memref<2x128xf32, #tpu.memory_space<vmem>>, vector<2x128xf32>
    %2 = arith.mulf %0, %1 : vector<2x128xf32>
    %3 = arith.truncf %2 : vector<2x128xf32> to vector<2x128xbf16>
    %c0_3 = arith.constant 0 : index
    %c0_4 = arith.constant 0 : index
    %4 = vector.load %arg6[%c0_3, %c0_4] : memref<128x128xbf16, #tpu.memory_space<vmem>>, vector<128x128xbf16>
    %cst = arith.constant dense<0.000000e+00> : vector<2x128xf32>
    %5 = tpu.matmul %3, %4, %cst {dimension_numbers = #tpu.dot_dimension_numbers<[1], [0], [0], [1], [0, 0, 1, 1], [], []>} : vector<2x128xbf16>, vector<128x128xbf16>, vector<2x128xf32> -> vector<2x128xf32>
    %c0_5 = arith.constant 0 : index
    %c0_6 = arith.constant 0 : index
    %6 = vector.load %arg7[%c0_5, %c0_6] : memref<1x128xf32, #tpu.memory_space<vmem>>, vector<1x128xf32>
    %7 = vector.broadcast %6 : vector<1x128xf32> to vector<2x128xf32>
    %8 = arith.addf %5, %7 : vector<2x128xf32>
    %9 = math.tanh %8 : vector<2x128xf32>
    %c0_7 = arith.constant 0 : index
    %c0_8 = arith.constant 0 : index
    %10 = vector.load %arg3[%c0_7, %c0_8] : memref<2x128xf32, #tpu.memory_space<vmem>>, vector<2x128xf32>
    %11 = arith.mulf %9, %10 : vector<2x128xf32>
    %12 = arith.truncf %11 : vector<2x128xf32> to vector<2x128xbf16>
    %c0_9 = arith.constant 0 : index
    %c0_10 = arith.constant 0 : index
    %13 = vector.load %arg8[%c0_9, %c0_10] : memref<128x128xbf16, #tpu.memory_space<vmem>>, vector<128x128xbf16>
    %cst_11 = arith.constant dense<0.000000e+00> : vector<2x128xf32>
    %14 = tpu.matmul %12, %13, %cst_11 {dimension_numbers = #tpu.dot_dimension_numbers<[1], [0], [0], [1], [0, 0, 1, 1], [], []>} : vector<2x128xbf16>, vector<128x128xbf16>, vector<2x128xf32> -> vector<2x128xf32>
    %c0_12 = arith.constant 0 : index
    %c0_13 = arith.constant 0 : index
    %15 = vector.load %arg9[%c0_12, %c0_13] : memref<1x128xf32, #tpu.memory_space<vmem>>, vector<1x128xf32>
    %16 = vector.broadcast %15 : vector<1x128xf32> to vector<2x128xf32>
    %17 = arith.addf %14, %16 : vector<2x128xf32>
    %c0_14 = arith.constant 0 : index
    %c0_15 = arith.constant 0 : index
    %18 = vector.load %arg4[%c0_14, %c0_15] : memref<2x128xf32, #tpu.memory_space<vmem>>, vector<2x128xf32>
    %19 = arith.mulf %17, %18 : vector<2x128xf32>
    %20 = arith.truncf %19 : vector<2x128xf32> to vector<2x128xbf16>
    %c0_16 = arith.constant 0 : index
    %c0_17 = arith.constant 0 : index
    %21 = vector.load %arg10[%c0_16, %c0_17] : memref<128x128xbf16, #tpu.memory_space<vmem>>, vector<128x128xbf16>
    %cst_18 = arith.constant dense<0.000000e+00> : vector<2x128xf32>
    %22 = tpu.matmul %20, %21, %cst_18 {dimension_numbers = #tpu.dot_dimension_numbers<[1], [0], [0], [1], [0, 0, 1, 1], [], []>} : vector<2x128xbf16>, vector<128x128xbf16>, vector<2x128xf32> -> vector<2x128xf32>
    %c0_19 = arith.constant 0 : index
    %c0_20 = arith.constant 0 : index
    %23 = vector.load %arg11[%c0_19, %c0_20] : memref<1x128xf32, #tpu.memory_space<vmem>>, vector<1x128xf32>
    %24 = vector.broadcast %23 : vector<1x128xf32> to vector<2x128xf32>
    %25 = arith.addf %22, %24 : vector<2x128xf32>
    %26 = math.tanh %25 : vector<2x128xf32>
    %c0_21 = arith.constant 0 : index
    %c0_22 = arith.constant 0 : index
    %27 = vector.load %arg5[%c0_21, %c0_22] : memref<2x128xf32, #tpu.memory_space<vmem>>, vector<2x128xf32>
    %28 = arith.mulf %26, %27 : vector<2x128xf32>
    %29 = arith.truncf %28 : vector<2x128xf32> to vector<2x128xbf16>
    %c0_23 = arith.constant 0 : index
    %c0_24 = arith.constant 0 : index
    %30 = vector.load %arg12[%c0_23, %c0_24] : memref<128x128xbf16, #tpu.memory_space<vmem>>, vector<128x128xbf16>
    %cst_25 = arith.constant dense<0.000000e+00> : vector<2x128xf32>
    %31 = tpu.matmul %29, %30, %cst_25 {dimension_numbers = #tpu.dot_dimension_numbers<[1], [0], [0], [1], [0, 0, 1, 1], [], []>} : vector<2x128xbf16>, vector<128x128xbf16>, vector<2x128xf32> -> vector<2x128xf32>
    %c0_26 = arith.constant 0 : index
    %c0_27 = arith.constant 0 : index
    %32 = vector.load %arg13[%c0_26, %c0_27] : memref<1x128xf32, #tpu.memory_space<vmem>>, vector<1x128xf32>
    %33 = vector.broadcast %32 : vector<1x128xf32> to vector<2x128xf32>
    %34 = arith.addf %31, %33 : vector<2x128xf32>
    %c0_28 = arith.constant 0 : index
    %c0_29 = arith.constant 0 : index
    %35 = vector.load %arg14[%c0_28, %c0_29] : memref<2x128xf32, #tpu.memory_space<vmem>>, vector<2x128xf32>
    tpu.vector_store %arg14[%c0_28, %c0_29], %34 {strides = array<i32>} : memref<2x128xf32, #tpu.memory_space<vmem>>, vector<2x128xf32>,
    return
  }
  func.func @transform_0(%arg0: i32) -> (i32, i32) {
    %c0_i32 = arith.constant 0 : i32
    %c0_i32_0 = arith.constant 0 : i32
    return %arg0, %c0_i32 : i32, i32
  }
  func.func @transform_1(%arg0: i32) -> (i32, i32) {
    %c0_i32 = arith.constant 0 : i32
    %c0_i32_0 = arith.constant 0 : i32
    return %arg0, %c0_i32 : i32, i32
  }
  func.func @transform_2(%arg0: i32) -> (i32, i32) {
    %c0_i32 = arith.constant 0 : i32
    %c0_i32_0 = arith.constant 0 : i32
    return %arg0, %c0_i32 : i32, i32
  }
  func.func @transform_3(%arg0: i32) -> (i32, i32) {
    %c0_i32 = arith.constant 0 : i32
    %c0_i32_0 = arith.constant 0 : i32
    return %arg0, %c0_i32 : i32, i32
  }
  func.func @transform_4(%arg0: i32) -> (i32, i32) {
    %c0_i32 = arith.constant 0 : i32
    %c0_i32_0 = arith.constant 0 : i32
    return %arg0, %c0_i32 : i32, i32
  }
  func.func @transform_5(%arg0: i32) -> (i32, i32) {
    %c0_i32 = arith.constant 0 : i32
    %c0_i32_0 = arith.constant 0 : i32
    %c0_i32_1 = arith.constant 0 : i32
    return %c0_i32, %c0_i32_0 : i32, i32
  }
  func.func @transform_6(%arg0: i32) -> (i32, i32) {
    %c0_i32 = arith.constant 0 : i32
    %c0_i32_0 = arith.constant 0 : i32
    %c0_i32_1 = arith.constant 0 : i32
    return %c0_i32, %c0_i32_0 : i32, i32
  }
  func.func @transform_7(%arg0: i32) -> (i32, i32) {
    %c0_i32 = arith.constant 0 : i32
    %c0_i32_0 = arith.constant 0 : i32
    %c0_i32_1 = arith.constant 0 : i32
    return %c0_i32, %c0_i32_0 : i32, i32
  }
  func.func @transform_8(%arg0: i32) -> (i32, i32) {
    %c0_i32 = arith.constant 0 : i32
    %c0_i32_0 = arith.constant 0 : i32
    %c0_i32_1 = arith.constant 0 : i32
    return %c0_i32, %c0_i32_0 : i32, i32
  }
  func.func @transform_9(%arg0: i32) -> (i32, i32) {
    %c0_i32 = arith.constant 0 : i32
    %c0_i32_0 = arith.constant 0 : i32
    %c0_i32_1 = arith.constant 0 : i32
    return %c0_i32, %c0_i32_0 : i32, i32
  }
  func.func @transform_10(%arg0: i32) -> (i32, i32) {
    %c0_i32 = arith.constant 0 : i32
    %c0_i32_0 = arith.constant 0 : i32
    %c0_i32_1 = arith.constant 0 : i32
    return %c0_i32, %c0_i32_0 : i32, i32
  }
  func.func @transform_11(%arg0: i32) -> (i32, i32) {
    %c0_i32 = arith.constant 0 : i32
    %c0_i32_0 = arith.constant 0 : i32
    %c0_i32_1 = arith.constant 0 : i32
    return %c0_i32, %c0_i32_0 : i32, i32
  }
  func.func @transform_12(%arg0: i32) -> (i32, i32) {
    %c0_i32 = arith.constant 0 : i32
    %c0_i32_0 = arith.constant 0 : i32
    %c0_i32_1 = arith.constant 0 : i32
    return %c0_i32, %c0_i32_0 : i32, i32
  }
  func.func @transform_13(%arg0: i32) -> (i32, i32) {
    %c0_i32 = arith.constant 0 : i32
    %c0_i32_0 = arith.constant 0 : i32
    return %arg0, %c0_i32 : i32, i32
  }
}

</mosaic_0001>

<bundles_post_ra>
// kernel: tpu_custom_call.1
= control target key start
LH: loop header
LB: loop body
LE: loop exit
PB: predicated region body
PF: predicated region fallthrough
CT: control target
= control target key end

     0   :  { %18 = vsyncpa [#allocation3], 0  ;;  %s1065_s0 = inlined_call_operand.hbm [shape: f32[2,128], index: 0, kind: input, shape index: {}]   ;;  %s1066_s1 = inlined_call_operand.hbm [shape: f32[2,128], index: 1, kind: input, shape index: {}]   ;;  %s1067_s2 = inlined_call_operand.hbm [shape: f32[2,128], index: 2, kind: input, shape index: {}]   ;;  %s1068_s3 = inlined_call_operand.vmem [shape: f32[2,128], index: 3, kind: input, shape index: {}]   ;;  %s1069_s4 = inlined_call_operand.hbm [shape: f32[2,128], index: 4, kind: input, shape index: {}]   ;;  %s1070_s5 = inlined_call_operand.hbm [shape: bf16[128,128], index: 5, kind: input, shape index: {}]   ;;  %s1071_s6 = inlined_call_operand.vmem [shape: f32[1,128], index: 6, kind: input, shape index: {}]   ;;  %s1072_s7 = inlined_call_operand.hbm [shape: bf16[128,128], index: 7, kind: input, shape index: {}]   ;;  %s1073_s8 = inlined_call_operand.vmem [shape: f32[1,128], index: 8, kind: input, shape index: {}]   ;;  %s1074_s9 = inlined_call_operand.hbm [shape: bf16[128,128], index: 9, kind: input, shape index: {}]   ;;  %s1075_s10 = inlined_call_operand.vmem [shape: f32[1,128], index: 10, kind: input, shape index: {}]   ;;  %s1076_s11 = inlined_call_operand.hbm [shape: bf16[128,128], index: 11, kind: input, shape index: {}]   ;;  %s1077_s12 = inlined_call_operand.vmem [shape: f32[1,128], index: 12, kind: input, shape index: {}]   ;;  %s1078_s13 = inlined_call_operand.hbm [shape: f32[2,128], index: 13, kind: output, shape index: {}]  }
   0x1   :  { %19 = vsyncpa [#allocation6], 0 }
   0x2   :  { %20 = vsyncpa [#allocation9], 0 }
   0x3   :  { %21 = vsyncpa [#allocation12], 0 }
   0x4   :  { %22 = vsyncpa [#allocation15], 0  ;;  %s40_s27 = sshll.u32 %s1066_s1, 4  ;;  %s41_s27 = int_to_ptr.hbm [resolvable:$true] %s40_s27 }
   0x5   :  { %23 = vsyncpa [#allocation4], 0  ;;  %s930_s28 = smov [#allocation5]   ;;  %s64_s15 = sshll.u32 %s1069_s4, 4  ;;  %s65_s15 = int_to_ptr.hbm [resolvable:$true] %s64_s15 }
   0x6   :  { %s42_s29 = sshll.u32 %s930_s28, 4  ;;  %s931_s16 = smov [#allocation8]   ;;  %s43_s29 = int_to_ptr.vmem [resolvable:$true] %s42_s29 }
   0x7   :  { %45 = dma.hbm_to_vmem [thread:$0]  %s41_s27, 32, %s43_s29, [#allocation6]  }
   0x8   :  { %s66_s17 = sshll.u32 %s931_s16, 4  ;;  %s89_s20 = sshll.u32 %s1072_s7, 4  ;;  %s67_s17 = int_to_ptr.vmem [resolvable:$true] %s66_s17  ;;  %s90_s20 = int_to_ptr.hbm [resolvable:$true] %s89_s20 }
   0x9   :  { %69 = dma.hbm_to_vmem [thread:$0]  %s65_s15, 32, %s67_s17, [#allocation9]  }
   0xa   :  { %s932_s1 = smov [#allocation11]   ;;  %s29_s24 = sshll.u32 %s1065_s0, 4  ;;  %s30_s24 = int_to_ptr.hbm [resolvable:$true] %s29_s24 }
   0xb   :  { %s91_s21 = sshll.u32 %s932_s1, 4  ;;  %s933_s25 = smov 64   ;;  %s92_s21 = int_to_ptr.vmem [resolvable:$true] %s91_s21 }
   0xc   :  { %s934_s4 = smov 4   ;;  %s935_s26 = smov [#allocation2]  }
   0xd   :  { %97 = dma.hbm_to_vmem [thread:$0]  %s90_s20, 1024, %s92_s21, [#allocation12], %s933_s25, %s933_s25, %s934_s4  }
   0xe   :  { %s31_s27 = sshll.u32 %s935_s26, 4  ;;  %s51_s7 = sshll.u32 %s1067_s2, 4  ;;  %s32_s27 = int_to_ptr.vmem [resolvable:$true] %s31_s27  ;;  %s52_s7 = int_to_ptr.hbm [resolvable:$true] %s51_s7 }
   0xf   :  { %34 = dma.hbm_to_vmem [thread:$0]  %s30_s24, 32, %s32_s27, [#allocation3]  }
  0x10   :  { %s74_s0 = sshll.u32 %s1070_s5, 4  ;;  %s936_s15 = smov [#allocation7]   ;;  %s75_s0 = int_to_ptr.hbm [resolvable:$true] %s74_s0 }
  0x11   :  { %s53_s16 = sshll.u32 %s936_s15, 4  ;;  %s937_s17 = smov [#allocation10]   ;;  %s54_s16 = int_to_ptr.vmem [resolvable:$true] %s53_s16 }
  0x12   :  { %56 = dma.hbm_to_vmem [thread:$0]  %s52_s7, 32, %s54_s16, [#allocation6]  }
  0x13   :  { %s76_s18 = sshll.u32 %s937_s17, 4  ;;  %s104_s1 = sshll.u32 %s1074_s9, 4  ;;  %s77_s18 = int_to_ptr.vmem [resolvable:$true] %s76_s18  ;;  %s105_s1 = int_to_ptr.hbm [resolvable:$true] %s104_s1 }
  0x14   :  { %82 = dma.hbm_to_vmem [thread:$0]  %s75_s0, 1024, %s77_s18, [#allocation9], %s933_s25, %s933_s25, %s934_s4  }
  0x15   :  { %s119_s5 = sshll.u32 %s1076_s11, 4  ;;  %s938_s22 = smov [#allocation13]   ;;  %s120_s5 = int_to_ptr.hbm [resolvable:$true] %s119_s5 }
  0x16   :  { %s106_s23 = sshll.u32 %s938_s22, 4  ;;  %s939_s24 = smov [#allocation14]   ;;  %s107_s23 = int_to_ptr.vmem [resolvable:$true] %s106_s23 }
  0x17   :  { %112 = dma.hbm_to_vmem [thread:$0]  %s105_s1, 1024, %s107_s23, [#allocation12], %s933_s25, %s933_s25, %s934_s4  }
  0x18   :  { %s121_s9 = sshll.u32 %s939_s24, 4  ;;  %s122_s9 = int_to_ptr.vmem [resolvable:$true] %s121_s9 }
  0x19   :  { %127 = dma.hbm_to_vmem [thread:$0]  %s120_s5, 1024, %s122_s9, [#allocation15], %s933_s25, %s933_s25, %s934_s4  }
  0x1a   :  { %918 = dma.done.wait [#allocation3], 32  }
  0x1b   :  { %919 = vsyncadd [#allocation3], 4294967264 }
  0x1c   :  { %920 = dma.done.wait [#allocation6], 64  }
  0x1d   :  { %921 = vsyncadd [#allocation6], 4294967232 }
  0x1e   :  { %922 = dma.done.wait [#allocation9], 1056  }
  0x1f   :  { %923 = vsyncadd [#allocation9], 4294966240 }
  0x20   :  { %924 = dma.done.wait [#allocation12], 2048  }
  0x21   :  { %925 = vsyncadd [#allocation12], 4294965248 }
  0x22   :  { %926 = dma.done.wait [#allocation15], 1024  }
  0x23   :  { %927 = vsyncadd [#allocation15], 4294966272  ;;  %v658_v0 = vld [vmem:[#allocation10 + $0x38] sm:$0xff]  ;;  %v657_v1 = vld [vmem:[#allocation10 + $0x30] sm:$0xff]  ;;  %s940_s7 = smov [#allocation16]   ;;  %s509_s15 = sshll.u32 %s1078_s13, 4  ;;  %s510_s15 = int_to_ptr.hbm [resolvable:$true] %s509_s15 }
  0x24   :  { %234 = vmatpush.bf16.msra.mxu0 %v658_v0  ;;  %v666_v2 = vld [vmem:[#allocation11 + $0x38] sm:$0xff]  ;;  %v665_v3 = vld [vmem:[#allocation11 + $0x30] sm:$0xff]  ;;  %v656_v4 = vld [vmem:[#allocation10 + $0x28] sm:$0xff]  ;;  %s507_s30 = sshll.u32 %s940_s7, 4  ;;  %s508_s30 = int_to_ptr.vmem [resolvable:$true] %s507_s30 }
  0x25   :  { %319 = vmatpush.bf16.msra.mxu1 %v666_v2  ;;  %v664_v5 = vld [vmem:[#allocation11 + $0x28] sm:$0xff]  ;;  %v655_v6 = vld [vmem:[#allocation10 + $0x20] sm:$0xff]  ;;  %v654_v8 = vld [vmem:[#allocation10 + $0x18] sm:$0xff] }
  0x26   :  { %v663_v7 = vld [vmem:[#allocation11 + $0x20] sm:$0xff]  ;;  %v662_v9 = vld [vmem:[#allocation11 + $0x18] sm:$0xff]  ;;  %v653_v10 = vld [vmem:[#allocation10 + $0x10] sm:$0xff] }
  0x27   :  { %v652_v11 = vld [vmem:[#allocation10 + $0x8] sm:$0xff]  ;;  %v162_v12 = vld [vmem:[#allocation2] sm:$0x3]  ;;  %v163_v13 = vld [vmem:[#allocation5] sm:$0x3] }
  0x28   :  { %235 = vmatpush.bf16.msra.mxu0 %v657_v1  ;;  %v164_v14 = vmul.f32 %v163_v13, %v162_v12  ;;  %v651_v15 = vld [vmem:[#allocation10] sm:$0xff]  ;;  %v661_v17 = vld [vmem:[#allocation11 + $0x10] sm:$0xff]  ;;  %v660_v18 = vld [vmem:[#allocation11 + $0x8] sm:$0xff] }
  0x29   :  { %320 = vmatpush.bf16.msra.mxu1 %v665_v3  ;;  %v659_v19 = vld [vmem:[#allocation11] sm:$0xff]  ;;  %v674_v20 = vld [vmem:[#allocation13 + $0x38] sm:$0xff]  ;;  %v673_v21 = vld [vmem:[#allocation13 + $0x30] sm:$0xff] }
  0x2a   :  { %v165_v16 = vpack.c.bf16 %v164_v14, %v164_v14  ;;  %403 = vmatpush.bf16.msra.mxu2 %v674_v20  ;;  %v672_v22 = vld [vmem:[#allocation13 + $0x28] sm:$0xff]  ;;  %v671_v23 = vld [vmem:[#allocation13 + $0x20] sm:$0xff]  ;;  %v670_v24 = vld [vmem:[#allocation13 + $0x18] sm:$0xff] }
  0x2b   :  { %v694_v25 = vld [vmem:[%s1071_s6] ss:$0 sm:$0xff]  ;;  %v669_v27 = vld [vmem:[#allocation13 + $0x10] sm:$0xff]  ;;  %v248_v29 = vld [vmem:[#allocation7] sm:$0x3] }
  0x2c   :  { %236 = vmatpush.bf16.msra.mxu0 %v656_v4  ;;  %v668_v34 = vld [vmem:[#allocation13 + $0x8] sm:$0xff]  ;;  %v667_v35 = vld [vmem:[#allocation13] sm:$0xff]  ;;  %v682_v36 = vld [vmem:[#allocation14 + $0x38] sm:$0xff] }
  0x2d   :  { %321 = vmatpush.bf16.msra.mxu1 %v664_v5  ;;  %488 = vmatpush.bf16.msra.mxu3 %v682_v36  ;;  %v681_v37 = vld [vmem:[#allocation14 + $0x30] sm:$0xff]  ;;  %v680_v38 = vld [vmem:[#allocation14 + $0x28] sm:$0xff]  ;;  %v679_v39 = vld [vmem:[#allocation14 + $0x20] sm:$0xff] }
  0x2e   :  { %404 = vmatpush.bf16.msra.mxu2 %v673_v21  ;;  %v678_v40 = vld [vmem:[#allocation14 + $0x18] sm:$0xff]  ;;  %v677_v48 = vld [vmem:[#allocation14 + $0x10] sm:$0xff]  ;;  %v676_v49 = vld [vmem:[#allocation14 + $0x8] sm:$0xff] }
  0x2f   :  { %v695_v41 = vld [vmem:[%s1073_s8] ss:$0 sm:$0xff]  ;;  %v675_v50 = vld [vmem:[#allocation14] sm:$0xff]  ;;  %v417_v54 = vld [vmem:[#allocation8] sm:$0x3] }
  0x30   :  { %237 = vmatpush.bf16.msra.mxu0 %v655_v6  ;;  %v332_v43 = vld [vmem:[%s1068_s3] sm:$0x3] }
  0x31   :  { %322 = vmatpush.bf16.msra.mxu1 %v663_v7  ;;  %489 = vmatpush.bf16.msra.mxu3 %v681_v37  ;;  %v696_v51 = vld [vmem:[%s1075_s10] ss:$0 sm:$0xff] }
  0x32   :  { %405 = vmatpush.bf16.msra.mxu2 %v672_v22  ;;  %v697_v59 = vld [vmem:[%s1077_s12] ss:$0 sm:$0xff] }
  0x34   :  { %238 = vmatpush.bf16.msra.mxu0 %v654_v8 }
  0x35   :  { %323 = vmatpush.bf16.msra.mxu1 %v662_v9  ;;  %490 = vmatpush.bf16.msra.mxu3 %v680_v38 }
  0x36   :  { %406 = vmatpush.bf16.msra.mxu2 %v671_v23 }
  0x38   :  { %239 = vmatpush.bf16.msra.mxu0 %v653_v10 }
  0x39   :  { %324 = vmatpush.bf16.msra.mxu1 %v661_v17  ;;  %491 = vmatpush.bf16.msra.mxu3 %v679_v39 }
  0x3a   :  { %407 = vmatpush.bf16.msra.mxu2 %v670_v24 }
  0x3c   :  { %240 = vmatpush.bf16.msra.mxu0 %v652_v11 }
  0x3d   :  { %325 = vmatpush.bf16.msra.mxu1 %v660_v18  ;;  %492 = vmatpush.bf16.msra.mxu3 %v678_v40 }
  0x3e   :  { %408 = vmatpush.bf16.msra.mxu2 %v669_v27 }
  0x40   :  { %241 = vmatpush.bf16.msra.mxu0 %v651_v15 }
  0x41   :  { %326 = vmatpush.bf16.msra.mxu1 %v659_v19  ;;  %493 = vmatpush.bf16.msra.mxu3 %v677_v48 }
  0x42   :  { %409 = vmatpush.bf16.msra.mxu2 %v668_v34 }
  0x43   :  { %242 = vmatmul.bf16.vlgmr.msra.gmra.mxu0 %v165_v16 }
  0x45   :  { %494 = vmatpush.bf16.msra.mxu3 %v676_v49 }
  0x46   :  { %410 = vmatpush.bf16.msra.mxu2 %v667_v35 }
  0x49   :  { %495 = vmatpush.bf16.msra.mxu3 %v675_v50 }
  0xc0   :  { %v243_v26 = vpop.f32.mrf.mxu0 }
  0xc1   :  { %v244_v28 = vadd.f32 %v694_v25, %v243_v26 }
  0xc3   :  { %698 = vtanh.f32 %v244_v28 }
  0xc8   :  { %v245_v30 = vpop.f32.mrf.mxu0 }
  0xc9   :  { %v699_v31 = vpop.eup %698 }
  0xca   :  { %v249_v32 = vmul.f32 %v699_v31, %v248_v29 }
  0xcc   :  { %v250_v33 = vpack.c.bf16 %v249_v32, %v249_v32 }
  0xce   :  { %327 = vmatmul.bf16.vlgmr.msra.gmra.mxu1 %v250_v33 }
 0x14b   :  { %v328_v42 = vpop.f32.mrf.mxu1 }
 0x14c   :  { %v329_v44 = vadd.f32 %v695_v41, %v328_v42 }
 0x14e   :  { %v333_v45 = vmul.f32 %v332_v43, %v329_v44 }
 0x150   :  { %v334_v46 = vpack.c.bf16 %v333_v45, %v333_v45 }
 0x152   :  { %411 = vmatmul.bf16.vlgmr.msra.gmra.mxu2 %v334_v46 }
 0x153   :  { %v330_v47 = vpop.f32.mrf.mxu1 }
 0x1d5   :  { %v412_v52 = vpop.f32.mrf.mxu2 }
 0x1d6   :  { %v413_v53 = vadd.f32 %v696_v51, %v412_v52 }
 0x1d8   :  { %700 = vtanh.f32 %v413_v53 }
 0x1dd   :  { %v414_v55 = vpop.f32.mrf.mxu2 }
 0x1de   :  { %v701_v56 = vpop.eup %700 }
 0x1df   :  { %v418_v57 = vmul.f32 %v701_v56, %v417_v54 }
 0x1e1   :  { %v419_v58 = vpack.c.bf16 %v418_v57, %v418_v57 }
 0x1e3   :  { %496 = vmatmul.bf16.vlgmr.msra.gmra.mxu3 %v419_v58 }
 0x266   :  { %v497_v60 = vpop.f32.mrf.mxu3 }
 0x267   :  { %v498_v61 = vadd.f32 %v697_v59, %v497_v60 }
 0x269   :  { %501 = vst [vmem:[#allocation16] sm:$0x3] %v498_v61 }
 0x26a   :  { %512 = dma.vmem_to_hbm [thread:$0]  %s508_s30, 32, %s510_s15, [#allocation4]  }
 0x26e   :  { %v499_v62 = vpop.f32.mrf.mxu3 }
 0x26f   :  { %928 = dma.done.wait [#allocation4], 32  }
 0x270   :  { %929 = vsyncadd [#allocation4], 4294967264 }
 0x271   :  { %517 = vsyncpa [#allocation3], 1 }
 0x272   :  { %518 = vsyncpa [#allocation6], 1 }
 0x273   :  { %519 = vsyncpa [#allocation9], 1 }
 0x274   :  { %520 = vsyncpa [#allocation12], 1 }
 0x275   :  { %521 = vsyncpa [#allocation15], 1 }
 0x276   :  { %522 = vsyncpa [#allocation4], 1 }

</bundles_post_ra>
